<compile_context>
chip_gen: v5e
topology: v5e:2x2
jax: 0.10.0
libtpu: 0.0.40
codegen_flags: <defaults>
</compile_context>

<pallas_src>
import math
import functools

import jax
import jax.numpy as jnp
from jax import lax
from jax.experimental import pallas as pl
from jax.experimental.pallas import tpu as pltpu


NEG_INF = -1000000000.0   # matches masked_fill constant in the PyTorch module


def mha_kernel(q_ref, k_ref, v_ref, mask_ref,
               wq_ref, bq_ref, wk_ref, bk_ref,
               wv_ref, bv_ref, wo_ref, bo_ref,
               o_ref, kproj_ref, vproj_ref, *, h):
    Sk = k_ref.shape[1]         # full key/value sequence length
    tq = q_ref.shape[1]         # query-tile length
    D = q_ref.shape[2]          # model dim
    qi = pl.program_id(1)       # query-tile index (innermost grid axis)

    # ---- K/V projections: once per batch element, cached head-major --------
    # NOTE: this cache relies on the grid order (batch outer, query-tile inner,
    # qi restarting at 0 for every batch element).  Do not reorder the grid or
    # mark the query axis "parallel" -- stale K/V would be read otherwise.
    @pl.when(qi == 0)
    def _():
        xk = k_ref[0]                                       # (Sk, D) bf16
        xv = v_ref[0]                                       # (Sk, D) bf16
        for i in range(h):      # h is small & static -> unrolled Python loop
            kp = jnp.dot(xk, wk_ref[i],
                         preferred_element_type=jnp.float32) + bk_ref[i]
            vp = jnp.dot(xv, wv_ref[i],
                         preferred_element_type=jnp.float32) + bv_ref[i]
            kproj_ref[i] = kp.astype(jnp.bfloat16)          # (Sk, d_k)
            vproj_ref[i] = vp.astype(jnp.bfloat16)          # (Sk, d_k)

    # ---- this query tile ----------------------------------------------------
    xq = q_ref[0]                                           # (tq, D) bf16
    # Mask compare + broadcast hoisted out of the unrolled head loop.
    masked = jnp.broadcast_to(mask_ref[0] == 0.0, (tq, Sk))  # (tq, Sk) bool

    acc = jnp.zeros((tq, D), jnp.float32)                   # f32 output acc
    for i in range(h):
        # Per-head projection with pre-split weights: no sub-128-lane slicing
        # of activations.  1/sqrt(d_k) is already folded into wq/bq.
        q_i = (jnp.dot(xq, wq_ref[i], preferred_element_type=jnp.float32)
               + bq_ref[i]).astype(jnp.bfloat16)            # (tq, d_k)
        k_i = kproj_ref[i]                                  # (Sk, d_k) bf16
        v_i = vproj_ref[i]                                  # (Sk, d_k) bf16

        # Q_i @ K_i^T as an NT dot_general (no materialized transpose).
        scores = lax.dot_general(q_i, k_i, (((1,), (1,)), ((), ())),
                                 preferred_element_type=jnp.float32)
        scores = jnp.where(masked, NEG_INF, scores)         # masked_fill

        # Numerically-stable softmax (f32); normalization deferred past the
        # value matmul -> only (tq, d_k) multiplies instead of (tq, Sk).
        m = jnp.max(scores, axis=-1, keepdims=True)
        e = jnp.exp(scores - m)
        s = jnp.sum(e, axis=-1, keepdims=True)              # (tq, 1)
        # TODO(synk): dropout(p_attn) skipped -- eval-mode (p=0) semantics.
        pv = jnp.dot(e.astype(jnp.bfloat16), v_i,
                     preferred_element_type=jnp.float32)    # (tq, d_k)
        head = pv * pl.reciprocal(s, approx=True)           # (tq, d_k) f32

        # Fold this head's output-projection slice in directly: f32
        # accumulation, full-lane-width adds, no bf16 heads slab, no masked
        # partial stores.
        acc = acc + jnp.dot(head.astype(jnp.bfloat16), wo_ref[i],
                            preferred_element_type=jnp.float32)

    o_ref[0] = (acc + bo_ref[...]).astype(o_ref.dtype)


def multi_head_attention(q, k, v, mask, params, h):
    """q: [B, Sq, D]; k, v: [B, Sk, D]; mask: [B, 1, Sk];
    params: (Wq, bq, Wk, bk, Wv, bv, Wo, bo) in nn.Linear convention."""
    B, Sq, D = q.shape
    Bk, Sk, Dk = k.shape
    assert D % h == 0 and Bk == B and Dk == D and v.shape == k.shape
    assert mask.shape == (B, 1, Sk)
    d_k = D // h
    out_dtype = q.dtype
    Wq, bq, Wk, bk, Wv, bv, Wo, bo = params

    # ---- one-time weight prep (wrapper side) --------------------------------
    # nn.Linear: y = x @ W.T + b.  Pre-transpose once, fold 1/sqrt(d_k) into
    # the Q projection, split per head, cast MXU operands to bf16.
    scale = 1.0 / math.sqrt(d_k)

    def split_heads_in(Wt, b):      # (D,D),(1,D) -> (h,D,d_k),(h,1,d_k)
        Wh = Wt.reshape(D, h, d_k).transpose(1, 0, 2)
        bh = b.reshape(1, h, d_k).transpose(1, 0, 2)
        return Wh, bh

    wq_h, bq_h = split_heads_in(Wq.T * scale, bq * scale)
    wk_h, bk_h = split_heads_in(Wk.T, bk)
    wv_h, bv_h = split_heads_in(Wv.T, bv)
    wo_h = Wo.T.reshape(h, d_k, D)          # per-head rows of output proj

    wq_h = wq_h.astype(jnp.bfloat16)
    wk_h = wk_h.astype(jnp.bfloat16)
    wv_h = wv_h.astype(jnp.bfloat16)
    wo_h = wo_h.astype(jnp.bfloat16)
    # Biases stay f32 (added to the f32 accumulations).

    # Cast activations to bf16 once here (halves HBM->VMEM DMA and the
    # double-buffered K/V input blocks); kernel would cast anyway.
    q_b = q.astype(jnp.bfloat16)
    k_b = k.astype(jnp.bfloat16)
    v_b = v.astype(jnp.bfloat16)

    # ---- generation-aware VMEM limit & query tiling -------------------------
    vmem_phys = 64 * 1024 * 1024            # conservative fallback (v7x)
    try:
        vmem_phys = int(pltpu.get_tpu_info().vmem_capacity_bytes)
    except Exception:
        pass
    vmem_limit = max(min((3 * vmem_phys) // 4, 100 * 1024 * 1024),
                     32 * 1024 * 1024)

    if Sq <= 128:
        Sq_pad, tq = Sq, Sq                 # single query tile, no padding
    else:
        Sq_pad = ((Sq + 127) // 128) * 128  # pad queries (review: no tq=Sq)
        big_vmem = vmem_phys >= 100 * 1024 * 1024   # v5e / v6e (128 MiB)
        tq = 256 if (big_vmem and Sq_pad % 256 == 0) else 128
        if Sq_pad != Sq:
            q_b = jnp.pad(q_b, ((0, 0), (0, Sq_pad - Sq), (0, 0)))
    n_q = Sq_pad // tq

    kernel = functools.partial(mha_kernel, h=h)

    q_spec = pl.BlockSpec((1, tq, D), lambda b, i: (b, i, 0))
    kv_spec = pl.BlockSpec((1, Sk, D), lambda b, i: (b, 0, 0))
    mask_spec = pl.BlockSpec((1, 1, Sk), lambda b, i: (b, 0, 0))
    # Grid-constant weights/biases (index map always (0,...)) are DMA'd once.
    win_spec = pl.BlockSpec((h, D, d_k), lambda b, i: (0, 0, 0))
    bin_spec = pl.BlockSpec((h, 1, d_k), lambda b, i: (0, 0, 0))
    wo_spec = pl.BlockSpec((h, d_k, D), lambda b, i: (0, 0, 0))
    bo_spec = pl.BlockSpec((1, D), lambda b, i: (0, 0))

    out = pl.pallas_call(
        kernel,
        out_shape=jax.ShapeDtypeStruct((B, Sq_pad, D), out_dtype),
        grid=(B, n_q),
        in_specs=[q_spec, kv_spec, kv_spec, mask_spec,
                  win_spec, bin_spec, win_spec, bin_spec,
                  win_spec, bin_spec, wo_spec, bo_spec],
        out_specs=pl.BlockSpec((1, tq, D), lambda b, i: (b, i, 0)),
        scratch_shapes=[pltpu.VMEM((h, Sk, d_k), jnp.bfloat16),   # K proj cache
                        pltpu.VMEM((h, Sk, d_k), jnp.bfloat16)],  # V proj cache
        compiler_params=pltpu.CompilerParams(
            # Batch tiles are independent (megacore-parallel on v7x); the
            # query-tile axis carries the cached K/V scratch -> sequential.
            dimension_semantics=("parallel", "arbitrary"),
            vmem_limit_bytes=vmem_limit),
    )(q_b, k_b, v_b, mask, wq_h, bq_h, wk_h, bk_h, wv_h, bv_h, wo_h, bo)

    return out[:, :Sq, :] if Sq_pad != Sq else out


def _reference_mha(q, k, v, mask, params, h):
    """Pure-JAX f32 reference mirroring the PyTorch forward (eval mode)."""
    Wq, bq, Wk, bk, Wv, bv, Wo, bo = params
    B, S, D = q.shape
    d_k = D // h

    def proj(x, W, b):
        y = x @ W.T + b[0]
        return y.reshape(B, S, h, d_k).transpose(0, 2, 1, 3)   # (B, h, S, d_k)

    Q, K, V = proj(q, Wq, bq), proj(k, Wk, bk), proj(v, Wv, bv)
    scores = jnp.einsum("bhqd,bhkd->bhqk", Q, K) / math.sqrt(d_k)
    m = mask[:, None, :, :]                                    # (B, 1, 1, S)
    scores = jnp.where(m == 0, NEG_INF, scores)
    p = jax.nn.softmax(scores, axis=-1)
    x = jnp.einsum("bhqk,bhkd->bhqd", p, V)
    x = x.transpose(0, 2, 1, 3).reshape(B, S, D)
    return x @ Wo.T + bo[0]


if __name__ == "__main__":
    B, S, D, H = 2, 8, 32, 4

    key = jax.random.PRNGKey(0)
    keys = jax.random.split(key, 12)

    q = jax.random.normal(keys[0], (B, S, D), jnp.float32)
    k = jax.random.normal(keys[1], (B, S, D), jnp.float32)
    v = jax.random.normal(keys[2], (B, S, D), jnp.float32)

    # mask: batch 0 fully valid; batch 1 has last 2 key positions masked.
    mask = jnp.ones((B, 1, S), jnp.float32)
    mask = mask.at[1, 0, -2:].set(0.0)

    def init_linear(kw, kb):
        bound = 1.0 / math.sqrt(D)
        W = jax.random.uniform(kw, (D, D), jnp.float32, -bound, bound)
        b = jax.random.uniform(kb, (1, D), jnp.float32, -bound, bound)
        return W, b

    Wq, bq = init_linear(keys[3], keys[4])
    Wk, bk = init_linear(keys[5], keys[6])
    Wv, bv = init_linear(keys[7], keys[8])
    Wo, bo = init_linear(keys[9], keys[10])
    params = (Wq, bq, Wk, bk, Wv, bv, Wo, bo)

    out = multi_head_attention(q, k, v, mask, params, H)
    out = jax.block_until_ready(out)

    ref = _reference_mha(q, k, v, mask, params, H)
    assert out.shape == (B, S, D)
    # bf16 matmul operands (f32 accumulation) -> loosen tolerance vs f32 ref.
    assert jnp.allclose(out, ref, atol=5e-2, rtol=5e-2), "mismatch vs reference"

    print("KERNEL_OK")
</pallas_src>

<mosaic_0001>
module attributes {stable_mosaic.version = 11 : i64} {
  func.func @mha_kernel(%arg0: i32, %arg1: i32, %arg2: memref<1x8x32xbf16, #tpu.memory_space<vmem>>, %arg3: memref<1x8x32xbf16, #tpu.memory_space<vmem>>, %arg4: memref<1x8x32xbf16, #tpu.memory_space<vmem>>, %arg5: memref<1x1x8xf32, #tpu.memory_space<vmem>>, %arg6: memref<4x32x8xbf16, #tpu.memory_space<vmem>>, %arg7: memref<4x1x8xf32, #tpu.memory_space<vmem>>, %arg8: memref<4x32x8xbf16, #tpu.memory_space<vmem>>, %arg9: memref<4x1x8xf32, #tpu.memory_space<vmem>>, %arg10: memref<4x32x8xbf16, #tpu.memory_space<vmem>>, %arg11: memref<4x1x8xf32, #tpu.memory_space<vmem>>, %arg12: memref<4x8x32xbf16, #tpu.memory_space<vmem>>, %arg13: memref<1x32xf32, #tpu.memory_space<vmem>>, %arg14: memref<1x8x32xf32, #tpu.memory_space<vmem>>, %arg15: memref<4x8x8xbf16, #tpu.memory_space<vmem>>, %arg16: memref<4x8x8xbf16, #tpu.memory_space<vmem>>) attributes {dimension_semantics = [#tpu.dimension_semantics<parallel>, #tpu.dimension_semantics<arbitrary>], iteration_bounds = array<i64: 2, 1>, scalar_prefetch = 0 : i64, scratch_operands = 2 : i64, tpu.core_type = #tpu.core_type<tc>, window_params = [{transform_indices = @transform_0, window_bounds = array<i64: 1, 8, 32>}, {transform_indices = @transform_1, window_bounds = array<i64: 1, 8, 32>}, {transform_indices = @transform_2, window_bounds = array<i64: 1, 8, 32>}, {transform_indices = @transform_3, window_bounds = array<i64: 1, 1, 8>}, {pipeline_mode = #tpu.pipeline_mode<synchronous>, transform_indices = @transform_4, window_bounds = array<i64: 4, 32, 8>}, {pipeline_mode = #tpu.pipeline_mode<synchronous>, transform_indices = @transform_5, window_bounds = array<i64: 4, 1, 8>}, {pipeline_mode = #tpu.pipeline_mode<synchronous>, transform_indices = @transform_6, window_bounds = array<i64: 4, 32, 8>}, {pipeline_mode = #tpu.pipeline_mode<synchronous>, transform_indices = @transform_7, window_bounds = array<i64: 4, 1, 8>}, {pipeline_mode = #tpu.pipeline_mode<synchronous>, transform_indices = @transform_8, window_bounds = array<i64: 4, 32, 8>}, {pipeline_mode = #tpu.pipeline_mode<synchronous>, transform_indices = @transform_9, window_bounds = array<i64: 4, 1, 8>}, {pipeline_mode = #tpu.pipeline_mode<synchronous>, transform_indices = @transform_10, window_bounds = array<i64: 4, 8, 32>}, {pipeline_mode = #tpu.pipeline_mode<synchronous>, transform_indices = @transform_11, window_bounds = array<i64: 1, 32>}, {transform_indices = @transform_12, window_bounds = array<i64: 1, 8, 32>}]} {
    %c0_i32 = arith.constant 0 : i32
    %0 = arith.cmpi eq, %arg1, %c0_i32 : i32
    %1 = arith.extui %0 : i1 to i32
    %c0_i32_0 = arith.constant 0 : i32
    %2 = arith.cmpi ne, %1, %c0_i32_0 : i32
    scf.if %2 {
      %c0_97 = arith.constant 0 : index
      %c0_98 = arith.constant 0 : index
      %c0_99 = arith.constant 0 : index
      %146 = vector.load %arg3[%c0_97, %c0_98, %c0_99] : memref<1x8x32xbf16, #tpu.memory_space<vmem>>, vector<1x8x32xbf16>
      %147 = vector.shape_cast %146 : vector<1x8x32xbf16> to vector<8x32xbf16>
      %c0_100 = arith.constant 0 : index
      %c0_101 = arith.constant 0 : index
      %c0_102 = arith.constant 0 : index
      %148 = vector.load %arg4[%c0_100, %c0_101, %c0_102] : memref<1x8x32xbf16, #tpu.memory_space<vmem>>, vector<1x8x32xbf16>
      %149 = vector.shape_cast %148 : vector<1x8x32xbf16> to vector<8x32xbf16>
      %c0_103 = arith.constant 0 : index
      %c0_104 = arith.constant 0 : index
      %c0_105 = arith.constant 0 : index
      %150 = vector.load %arg8[%c0_103, %c0_104, %c0_105] : memref<4x32x8xbf16, #tpu.memory_space<vmem>>, vector<1x32x8xbf16>
      %151 = vector.shape_cast %150 : vector<1x32x8xbf16> to vector<32x8xbf16>
      %cst_106 = arith.constant dense<0.000000e+00> : vector<8x8xf32>
      %152 = tpu.matmul %147, %151, %cst_106 {dimension_numbers = #tpu.dot_dimension_numbers<[1], [0], [0], [1], [0, 0, 1, 1], [], []>} : vector<8x32xbf16>, vector<32x8xbf16>, vector<8x8xf32> -> vector<8x8xf32>
      %c0_107 = arith.constant 0 : index
      %c0_108 = arith.constant 0 : index
      %c0_109 = arith.constant 0 : index
      %153 = vector.load %arg9[%c0_107, %c0_108, %c0_109] : memref<4x1x8xf32, #tpu.memory_space<vmem>>, vector<1x1x8xf32>
      %154 = vector.shape_cast %153 : vector<1x1x8xf32> to vector<1x8xf32>
      %155 = vector.broadcast %154 : vector<1x8xf32> to vector<8x8xf32>
      %156 = arith.addf %152, %155 : vector<8x8xf32>
      %c0_110 = arith.constant 0 : index
      %c0_111 = arith.constant 0 : index
      %c0_112 = arith.constant 0 : index
      %157 = vector.load %arg10[%c0_110, %c0_111, %c0_112] : memref<4x32x8xbf16, #tpu.memory_space<vmem>>, vector<1x32x8xbf16>
      %158 = vector.shape_cast %157 : vector<1x32x8xbf16> to vector<32x8xbf16>
      %cst_113 = arith.constant dense<0.000000e+00> : vector<8x8xf32>
      %159 = tpu.matmul %149, %158, %cst_113 {dimension_numbers = #tpu.dot_dimension_numbers<[1], [0], [0], [1], [0, 0, 1, 1], [], []>} : vector<8x32xbf16>, vector<32x8xbf16>, vector<8x8xf32> -> vector<8x8xf32>
      %c0_114 = arith.constant 0 : index
      %c0_115 = arith.constant 0 : index
      %c0_116 = arith.constant 0 : index
      %160 = vector.load %arg11[%c0_114, %c0_115, %c0_116] : memref<4x1x8xf32, #tpu.memory_space<vmem>>, vector<1x1x8xf32>
      %161 = vector.shape_cast %160 : vector<1x1x8xf32> to vector<1x8xf32>
      %162 = vector.broadcast %161 : vector<1x8xf32> to vector<8x8xf32>
      %163 = arith.addf %159, %162 : vector<8x8xf32>
      %164 = arith.truncf %156 : vector<8x8xf32> to vector<8x8xbf16>
      %c0_117 = arith.constant 0 : index
      %c0_118 = arith.constant 0 : index
      %c0_119 = arith.constant 0 : index
      %165 = vector.load %arg15[%c0_117, %c0_118, %c0_119] : memref<4x8x8xbf16, #tpu.memory_space<vmem>>, vector<1x8x8xbf16>
      %166 = vector.shape_cast %165 : vector<1x8x8xbf16> to vector<8x8xbf16>
      %167 = vector.shape_cast %164 : vector<8x8xbf16> to vector<1x8x8xbf16>
      tpu.vector_store %arg15[%c0_117, %c0_118, %c0_119], %167 {strides = array<i32>} : memref<4x8x8xbf16, #tpu.memory_space<vmem>>, vector<1x8x8xbf16>,
      %168 = arith.truncf %163 : vector<8x8xf32> to vector<8x8xbf16>
      %c0_120 = arith.constant 0 : index
      %c0_121 = arith.constant 0 : index
      %c0_122 = arith.constant 0 : index
      %169 = vector.load %arg16[%c0_120, %c0_121, %c0_122] : memref<4x8x8xbf16, #tpu.memory_space<vmem>>, vector<1x8x8xbf16>
      %170 = vector.shape_cast %169 : vector<1x8x8xbf16> to vector<8x8xbf16>
      %171 = vector.shape_cast %168 : vector<8x8xbf16> to vector<1x8x8xbf16>
      tpu.vector_store %arg16[%c0_120, %c0_121, %c0_122], %171 {strides = array<i32>} : memref<4x8x8xbf16, #tpu.memory_space<vmem>>, vector<1x8x8xbf16>,
      %c1_123 = arith.constant 1 : index
      %c0_124 = arith.constant 0 : index
      %c0_125 = arith.constant 0 : index
      %172 = vector.load %arg8[%c1_123, %c0_124, %c0_125] : memref<4x32x8xbf16, #tpu.memory_space<vmem>>, vector<1x32x8xbf16>
      %173 = vector.shape_cast %172 : vector<1x32x8xbf16> to vector<32x8xbf16>
      %cst_126 = arith.constant dense<0.000000e+00> : vector<8x8xf32>
      %174 = tpu.matmul %147, %173, %cst_126 {dimension_numbers = #tpu.dot_dimension_numbers<[1], [0], [0], [1], [0, 0, 1, 1], [], []>} : vector<8x32xbf16>, vector<32x8xbf16>, vector<8x8xf32> -> vector<8x8xf32>
      %c1_127 = arith.constant 1 : index
      %c0_128 = arith.constant 0 : index
      %c0_129 = arith.constant 0 : index
      %175 = vector.load %arg9[%c1_127, %c0_128, %c0_129] : memref<4x1x8xf32, #tpu.memory_space<vmem>>, vector<1x1x8xf32>
      %176 = vector.shape_cast %175 : vector<1x1x8xf32> to vector<1x8xf32>
      %177 = vector.broadcast %176 : vector<1x8xf32> to vector<8x8xf32>
      %178 = arith.addf %174, %177 : vector<8x8xf32>
      %c1_130 = arith.constant 1 : index
      %c0_131 = arith.constant 0 : index
      %c0_132 = arith.constant 0 : index
      %179 = vector.load %arg10[%c1_130, %c0_131, %c0_132] : memref<4x32x8xbf16, #tpu.memory_space<vmem>>, vector<1x32x8xbf16>
      %180 = vector.shape_cast %179 : vector<1x32x8xbf16> to vector<32x8xbf16>
      %cst_133 = arith.constant dense<0.000000e+00> : vector<8x8xf32>
      %181 = tpu.matmul %149, %180, %cst_133 {dimension_numbers = #tpu.dot_dimension_numbers<[1], [0], [0], [1], [0, 0, 1, 1], [], []>} : vector<8x32xbf16>, vector<32x8xbf16>, vector<8x8xf32> -> vector<8x8xf32>
      %c1_134 = arith.constant 1 : index
      %c0_135 = arith.constant 0 : index
      %c0_136 = arith.constant 0 : index
      %182 = vector.load %arg11[%c1_134, %c0_135, %c0_136] : memref<4x1x8xf32, #tpu.memory_space<vmem>>, vector<1x1x8xf32>
      %183 = vector.shape_cast %182 : vector<1x1x8xf32> to vector<1x8xf32>
      %184 = vector.broadcast %183 : vector<1x8xf32> to vector<8x8xf32>
      %185 = arith.addf %181, %184 : vector<8x8xf32>
      %186 = arith.truncf %178 : vector<8x8xf32> to vector<8x8xbf16>
      %c1_137 = arith.constant 1 : index
      %c0_138 = arith.constant 0 : index
      %c0_139 = arith.constant 0 : index
      %187 = vector.load %arg15[%c1_137, %c0_138, %c0_139] : memref<4x8x8xbf16, #tpu.memory_space<vmem>>, vector<1x8x8xbf16>
      %188 = vector.shape_cast %187 : vector<1x8x8xbf16> to vector<8x8xbf16>
      %189 = vector.shape_cast %186 : vector<8x8xbf16> to vector<1x8x8xbf16>
      tpu.vector_store %arg15[%c1_137, %c0_138, %c0_139], %189 {strides = array<i32>} : memref<4x8x8xbf16, #tpu.memory_space<vmem>>, vector<1x8x8xbf16>,
      %190 = arith.truncf %185 : vector<8x8xf32> to vector<8x8xbf16>
      %c1_140 = arith.constant 1 : index
      %c0_141 = arith.constant 0 : index
      %c0_142 = arith.constant 0 : index
      %191 = vector.load %arg16[%c1_140, %c0_141, %c0_142] : memref<4x8x8xbf16, #tpu.memory_space<vmem>>, vector<1x8x8xbf16>
      %192 = vector.shape_cast %191 : vector<1x8x8xbf16> to vector<8x8xbf16>
      %193 = vector.shape_cast %190 : vector<8x8xbf16> to vector<1x8x8xbf16>
      tpu.vector_store %arg16[%c1_140, %c0_141, %c0_142], %193 {strides = array<i32>} : memref<4x8x8xbf16, #tpu.memory_space<vmem>>, vector<1x8x8xbf16>,
      %c2_143 = arith.constant 2 : index
      %c0_144 = arith.constant 0 : index
      %c0_145 = arith.constant 0 : index
      %194 = vector.load %arg8[%c2_143, %c0_144, %c0_145] : memref<4x32x8xbf16, #tpu.memory_space<vmem>>, vector<1x32x8xbf16>
      %195 = vector.shape_cast %194 : vector<1x32x8xbf16> to vector<32x8xbf16>
      %cst_146 = arith.constant dense<0.000000e+00> : vector<8x8xf32>
      %196 = tpu.matmul %147, %195, %cst_146 {dimension_numbers = #tpu.dot_dimension_numbers<[1], [0], [0], [1], [0, 0, 1, 1], [], []>} : vector<8x32xbf16>, vector<32x8xbf16>, vector<8x8xf32> -> vector<8x8xf32>
      %c2_147 = arith.constant 2 : index
      %c0_148 = arith.constant 0 : index
      %c0_149 = arith.constant 0 : index
      %197 = vector.load %arg9[%c2_147, %c0_148, %c0_149] : memref<4x1x8xf32, #tpu.memory_space<vmem>>, vector<1x1x8xf32>
      %198 = vector.shape_cast %197 : vector<1x1x8xf32> to vector<1x8xf32>
      %199 = vector.broadcast %198 : vector<1x8xf32> to vector<8x8xf32>
      %200 = arith.addf %196, %199 : vector<8x8xf32>
      %c2_150 = arith.constant 2 : index
      %c0_151 = arith.constant 0 : index
      %c0_152 = arith.constant 0 : index
      %201 = vector.load %arg10[%c2_150, %c0_151, %c0_152] : memref<4x32x8xbf16, #tpu.memory_space<vmem>>, vector<1x32x8xbf16>
      %202 = vector.shape_cast %201 : vector<1x32x8xbf16> to vector<32x8xbf16>
      %cst_153 = arith.constant dense<0.000000e+00> : vector<8x8xf32>
      %203 = tpu.matmul %149, %202, %cst_153 {dimension_numbers = #tpu.dot_dimension_numbers<[1], [0], [0], [1], [0, 0, 1, 1], [], []>} : vector<8x32xbf16>, vector<32x8xbf16>, vector<8x8xf32> -> vector<8x8xf32>
      %c2_154 = arith.constant 2 : index
      %c0_155 = arith.constant 0 : index
      %c0_156 = arith.constant 0 : index
      %204 = vector.load %arg11[%c2_154, %c0_155, %c0_156] : memref<4x1x8xf32, #tpu.memory_space<vmem>>, vector<1x1x8xf32>
      %205 = vector.shape_cast %204 : vector<1x1x8xf32> to vector<1x8xf32>
      %206 = vector.broadcast %205 : vector<1x8xf32> to vector<8x8xf32>
      %207 = arith.addf %203, %206 : vector<8x8xf32>
      %208 = arith.truncf %200 : vector<8x8xf32> to vector<8x8xbf16>
      %c2_157 = arith.constant 2 : index
      %c0_158 = arith.constant 0 : index
      %c0_159 = arith.constant 0 : index
      %209 = vector.load %arg15[%c2_157, %c0_158, %c0_159] : memref<4x8x8xbf16, #tpu.memory_space<vmem>>, vector<1x8x8xbf16>
      %210 = vector.shape_cast %209 : vector<1x8x8xbf16> to vector<8x8xbf16>
      %211 = vector.shape_cast %208 : vector<8x8xbf16> to vector<1x8x8xbf16>
      tpu.vector_store %arg15[%c2_157, %c0_158, %c0_159], %211 {strides = array<i32>} : memref<4x8x8xbf16, #tpu.memory_space<vmem>>, vector<1x8x8xbf16>,
      %212 = arith.truncf %207 : vector<8x8xf32> to vector<8x8xbf16>
      %c2_160 = arith.constant 2 : index
      %c0_161 = arith.constant 0 : index
      %c0_162 = arith.constant 0 : index
      %213 = vector.load %arg16[%c2_160, %c0_161, %c0_162] : memref<4x8x8xbf16, #tpu.memory_space<vmem>>, vector<1x8x8xbf16>
      %214 = vector.shape_cast %213 : vector<1x8x8xbf16> to vector<8x8xbf16>
      %215 = vector.shape_cast %212 : vector<8x8xbf16> to vector<1x8x8xbf16>
      tpu.vector_store %arg16[%c2_160, %c0_161, %c0_162], %215 {strides = array<i32>} : memref<4x8x8xbf16, #tpu.memory_space<vmem>>, vector<1x8x8xbf16>,
      %c3_163 = arith.constant 3 : index
      %c0_164 = arith.constant 0 : index
      %c0_165 = arith.constant 0 : index
      %216 = vector.load %arg8[%c3_163, %c0_164, %c0_165] : memref<4x32x8xbf16, #tpu.memory_space<vmem>>, vector<1x32x8xbf16>
      %217 = vector.shape_cast %216 : vector<1x32x8xbf16> to vector<32x8xbf16>
      %cst_166 = arith.constant dense<0.000000e+00> : vector<8x8xf32>
      %218 = tpu.matmul %147, %217, %cst_166 {dimension_numbers = #tpu.dot_dimension_numbers<[1], [0], [0], [1], [0, 0, 1, 1], [], []>} : vector<8x32xbf16>, vector<32x8xbf16>, vector<8x8xf32> -> vector<8x8xf32>
      %c3_167 = arith.constant 3 : index
      %c0_168 = arith.constant 0 : index
      %c0_169 = arith.constant 0 : index
      %219 = vector.load %arg9[%c3_167, %c0_168, %c0_169] : memref<4x1x8xf32, #tpu.memory_space<vmem>>, vector<1x1x8xf32>
      %220 = vector.shape_cast %219 : vector<1x1x8xf32> to vector<1x8xf32>
      %221 = vector.broadcast %220 : vector<1x8xf32> to vector<8x8xf32>
      %222 = arith.addf %218, %221 : vector<8x8xf32>
      %c3_170 = arith.constant 3 : index
      %c0_171 = arith.constant 0 : index
      %c0_172 = arith.constant 0 : index
      %223 = vector.load %arg10[%c3_170, %c0_171, %c0_172] : memref<4x32x8xbf16, #tpu.memory_space<vmem>>, vector<1x32x8xbf16>
      %224 = vector.shape_cast %223 : vector<1x32x8xbf16> to vector<32x8xbf16>
      %cst_173 = arith.constant dense<0.000000e+00> : vector<8x8xf32>
      %225 = tpu.matmul %149, %224, %cst_173 {dimension_numbers = #tpu.dot_dimension_numbers<[1], [0], [0], [1], [0, 0, 1, 1], [], []>} : vector<8x32xbf16>, vector<32x8xbf16>, vector<8x8xf32> -> vector<8x8xf32>
      %c3_174 = arith.constant 3 : index
      %c0_175 = arith.constant 0 : index
      %c0_176 = arith.constant 0 : index
      %226 = vector.load %arg11[%c3_174, %c0_175, %c0_176] : memref<4x1x8xf32, #tpu.memory_space<vmem>>, vector<1x1x8xf32>
      %227 = vector.shape_cast %226 : vector<1x1x8xf32> to vector<1x8xf32>
      %228 = vector.broadcast %227 : vector<1x8xf32> to vector<8x8xf32>
      %229 = arith.addf %225, %228 : vector<8x8xf32>
      %230 = arith.truncf %222 : vector<8x8xf32> to vector<8x8xbf16>
      %c3_177 = arith.constant 3 : index
      %c0_178 = arith.constant 0 : index
      %c0_179 = arith.constant 0 : index
      %231 = vector.load %arg15[%c3_177, %c0_178, %c0_179] : memref<4x8x8xbf16, #tpu.memory_space<vmem>>, vector<1x8x8xbf16>
      %232 = vector.shape_cast %231 : vector<1x8x8xbf16> to vector<8x8xbf16>
      %233 = vector.shape_cast %230 : vector<8x8xbf16> to vector<1x8x8xbf16>
      tpu.vector_store %arg15[%c3_177, %c0_178, %c0_179], %233 {strides = array<i32>} : memref<4x8x8xbf16, #tpu.memory_space<vmem>>, vector<1x8x8xbf16>,
      %234 = arith.truncf %229 : vector<8x8xf32> to vector<8x8xbf16>
      %c3_180 = arith.constant 3 : index
      %c0_181 = arith.constant 0 : index
      %c0_182 = arith.constant 0 : index
      %235 = vector.load %arg16[%c3_180, %c0_181, %c0_182] : memref<4x8x8xbf16, #tpu.memory_space<vmem>>, vector<1x8x8xbf16>
      %236 = vector.shape_cast %235 : vector<1x8x8xbf16> to vector<8x8xbf16>
      %237 = vector.shape_cast %234 : vector<8x8xbf16> to vector<1x8x8xbf16>
      tpu.vector_store %arg16[%c3_180, %c0_181, %c0_182], %237 {strides = array<i32>} : memref<4x8x8xbf16, #tpu.memory_space<vmem>>, vector<1x8x8xbf16>,
    } else {
    }
    %c0 = arith.constant 0 : index
    %c0_1 = arith.constant 0 : index
    %c0_2 = arith.constant 0 : index
    %3 = vector.load %arg2[%c0, %c0_1, %c0_2] : memref<1x8x32xbf16, #tpu.memory_space<vmem>>, vector<1x8x32xbf16>
    %4 = vector.shape_cast %3 : vector<1x8x32xbf16> to vector<8x32xbf16>
    %c0_3 = arith.constant 0 : index
    %c0_4 = arith.constant 0 : index
    %c0_5 = arith.constant 0 : index
    %5 = vector.load %arg5[%c0_3, %c0_4, %c0_5] : memref<1x1x8xf32, #tpu.memory_space<vmem>>, vector<1x1x8xf32>
    %6 = vector.shape_cast %5 : vector<1x1x8xf32> to vector<1x8xf32>
    %cst = arith.constant 0.000000e+00 : f32
    %7 = vector.broadcast %cst : f32 to vector<1x8xf32>
    %8 = arith.cmpf oeq, %6, %7 : vector<1x8xf32>
    %9 = vector.shape_cast %8 : vector<1x8xi1> to vector<1x8xi1>
    %10 = vector.broadcast %9 : vector<1x8xi1> to vector<8x8xi1>
    %cst_6 = arith.constant 0.000000e+00 : f32
    %11 = vector.broadcast %cst_6 : f32 to vector<8x32xf32>
    %c0_7 = arith.constant 0 : index
    %c0_8 = arith.constant 0 : index
    %c0_9 = arith.constant 0 : index
    %12 = vector.load %arg6[%c0_7, %c0_8, %c0_9] : memref<4x32x8xbf16, #tpu.memory_space<vmem>>, vector<1x32x8xbf16>
    %13 = vector.shape_cast %12 : vector<1x32x8xbf16> to vector<32x8xbf16>
    %cst_10 = arith.constant dense<0.000000e+00> : vector<8x8xf32>
    %14 = tpu.matmul %4, %13, %cst_10 {dimension_numbers = #tpu.dot_dimension_numbers<[1], [0], [0], [1], [0, 0, 1, 1], [], []>} : vector<8x32xbf16>, vector<32x8xbf16>, vector<8x8xf32> -> vector<8x8xf32>
    %c0_11 = arith.constant 0 : index
    %c0_12 = arith.constant 0 : index
    %c0_13 = arith.constant 0 : index
    %15 = vector.load %arg7[%c0_11, %c0_12, %c0_13] : memref<4x1x8xf32, #tpu.memory_space<vmem>>, vector<1x1x8xf32>
    %16 = vector.shape_cast %15 : vector<1x1x8xf32> to vector<1x8xf32>
    %17 = vector.broadcast %16 : vector<1x8xf32> to vector<8x8xf32>
    %18 = arith.addf %14, %17 : vector<8x8xf32>
    %19 = arith.truncf %18 : vector<8x8xf32> to vector<8x8xbf16>
    %c0_14 = arith.constant 0 : index
    %c0_15 = arith.constant 0 : index
    %c0_16 = arith.constant 0 : index
    %20 = vector.load %arg15[%c0_14, %c0_15, %c0_16] : memref<4x8x8xbf16, #tpu.memory_space<vmem>>, vector<1x8x8xbf16>
    %21 = vector.shape_cast %20 : vector<1x8x8xbf16> to vector<8x8xbf16>
    %c0_17 = arith.constant 0 : index
    %c0_18 = arith.constant 0 : index
    %c0_19 = arith.constant 0 : index
    %22 = vector.load %arg16[%c0_17, %c0_18, %c0_19] : memref<4x8x8xbf16, #tpu.memory_space<vmem>>, vector<1x8x8xbf16>
    %23 = vector.shape_cast %22 : vector<1x8x8xbf16> to vector<8x8xbf16>
    %cst_20 = arith.constant dense<0.000000e+00> : vector<8x8xf32>
    %24 = tpu.matmul %19, %21, %cst_20 {dimension_numbers = #tpu.dot_dimension_numbers<[1], [1], [0], [0], [0, 0, 1, 0], [], []>} : vector<8x8xbf16>, vector<8x8xbf16>, vector<8x8xf32> -> vector<8x8xf32>
    %cst_21 = arith.constant -1.000000e+09 : f32
    %25 = vector.broadcast %cst_21 : f32 to vector<8x8xf32>
    %26 = arith.select %10, %25, %24 : vector<8x8xi1>, vector<8x8xf32>
    %cst_22 = arith.constant dense<0xFF800000> : vector<8xf32>
    %27 = vector.multi_reduction <maximumf>, %26, %cst_22 [1] : vector<8x8xf32> to vector<8xf32>
    %28 = vector.shape_cast %27 : vector<8xf32> to vector<8x1xf32>
    %29 = vector.broadcast %28 : vector<8x1xf32> to vector<8x8xf32>
    %30 = arith.subf %26, %29 : vector<8x8xf32>
    %31 = math.exp %30 : vector<8x8xf32>
    %cst_23 = arith.constant dense<0.000000e+00> : vector<8xf32>
    %32 = vector.multi_reduction <add>, %31, %cst_23 [1] : vector<8x8xf32> to vector<8xf32>
    %33 = vector.shape_cast %32 : vector<8xf32> to vector<8x1xf32>
    %34 = arith.truncf %31 : vector<8x8xf32> to vector<8x8xbf16>
    %cst_24 = arith.constant dense<0.000000e+00> : vector<8x8xf32>
    %35 = tpu.matmul %34, %23, %cst_24 {dimension_numbers = #tpu.dot_dimension_numbers<[1], [0], [0], [1], [0, 0, 1, 1], [], []>} : vector<8x8xbf16>, vector<8x8xbf16>, vector<8x8xf32> -> vector<8x8xf32>
    %36 = tpu.reciprocal %33 {approx = true} : vector<8x1xf32> -> vector<8x1xf32>
    %37 = vector.broadcast %36 : vector<8x1xf32> to vector<8x8xf32>
    %38 = arith.mulf %35, %37 : vector<8x8xf32>
    %39 = arith.truncf %38 : vector<8x8xf32> to vector<8x8xbf16>
    %c0_25 = arith.constant 0 : index
    %c0_26 = arith.constant 0 : index
    %c0_27 = arith.constant 0 : index
    %40 = vector.load %arg12[%c0_25, %c0_26, %c0_27] : memref<4x8x32xbf16, #tpu.memory_space<vmem>>, vector<1x8x32xbf16>
    %41 = vector.shape_cast %40 : vector<1x8x32xbf16> to vector<8x32xbf16>
    %cst_28 = arith.constant dense<0.000000e+00> : vector<8x32xf32>
    %42 = tpu.matmul %39, %41, %cst_28 {dimension_numbers = #tpu.dot_dimension_numbers<[1], [0], [0], [1], [0, 0, 1, 1], [], []>} : vector<8x8xbf16>, vector<8x32xbf16>, vector<8x32xf32> -> vector<8x32xf32>
    %43 = arith.addf %11, %42 : vector<8x32xf32>
    %c1 = arith.constant 1 : index
    %c0_29 = arith.constant 0 : index
    %c0_30 = arith.constant 0 : index
    %44 = vector.load %arg6[%c1, %c0_29, %c0_30] : memref<4x32x8xbf16, #tpu.memory_space<vmem>>, vector<1x32x8xbf16>
    %45 = vector.shape_cast %44 : vector<1x32x8xbf16> to vector<32x8xbf16>
    %cst_31 = arith.constant dense<0.000000e+00> : vector<8x8xf32>
    %46 = tpu.matmul %4, %45, %cst_31 {dimension_numbers = #tpu.dot_dimension_numbers<[1], [0], [0], [1], [0, 0, 1, 1], [], []>} : vector<8x32xbf16>, vector<32x8xbf16>, vector<8x8xf32> -> vector<8x8xf32>
    %c1_32 = arith.constant 1 : index
    %c0_33 = arith.constant 0 : index
    %c0_34 = arith.constant 0 : index
    %47 = vector.load %arg7[%c1_32, %c0_33, %c0_34] : memref<4x1x8xf32, #tpu.memory_space<vmem>>, vector<1x1x8xf32>
    %48 = vector.shape_cast %47 : vector<1x1x8xf32> to vector<1x8xf32>
    %49 = vector.broadcast %48 : vector<1x8xf32> to vector<8x8xf32>
    %50 = arith.addf %46, %49 : vector<8x8xf32>
    %51 = arith.truncf %50 : vector<8x8xf32> to vector<8x8xbf16>
    %c1_35 = arith.constant 1 : index
    %c0_36 = arith.constant 0 : index
    %c0_37 = arith.constant 0 : index
    %52 = vector.load %arg15[%c1_35, %c0_36, %c0_37] : memref<4x8x8xbf16, #tpu.memory_space<vmem>>, vector<1x8x8xbf16>
    %53 = vector.shape_cast %52 : vector<1x8x8xbf16> to vector<8x8xbf16>
    %c1_38 = arith.constant 1 : index
    %c0_39 = arith.constant 0 : index
    %c0_40 = arith.constant 0 : index
    %54 = vector.load %arg16[%c1_38, %c0_39, %c0_40] : memref<4x8x8xbf16, #tpu.memory_space<vmem>>, vector<1x8x8xbf16>
    %55 = vector.shape_cast %54 : vector<1x8x8xbf16> to vector<8x8xbf16>
    %cst_41 = arith.constant dense<0.000000e+00> : vector<8x8xf32>
    %56 = tpu.matmul %51, %53, %cst_41 {dimension_numbers = #tpu.dot_dimension_numbers<[1], [1], [0], [0], [0, 0, 1, 0], [], []>} : vector<8x8xbf16>, vector<8x8xbf16>, vector<8x8xf32> -> vector<8x8xf32>
    %cst_42 = arith.constant -1.000000e+09 : f32
    %57 = vector.broadcast %cst_42 : f32 to vector<8x8xf32>
    %58 = arith.select %10, %57, %56 : vector<8x8xi1>, vector<8x8xf32>
    %cst_43 = arith.constant dense<0xFF800000> : vector<8xf32>
    %59 = vector.multi_reduction <maximumf>, %58, %cst_43 [1] : vector<8x8xf32> to vector<8xf32>
    %60 = vector.shape_cast %59 : vector<8xf32> to vector<8x1xf32>
    %61 = vector.broadcast %60 : vector<8x1xf32> to vector<8x8xf32>
    %62 = arith.subf %58, %61 : vector<8x8xf32>
    %63 = math.exp %62 : vector<8x8xf32>
    %cst_44 = arith.constant dense<0.000000e+00> : vector<8xf32>
    %64 = vector.multi_reduction <add>, %63, %cst_44 [1] : vector<8x8xf32> to vector<8xf32>
    %65 = vector.shape_cast %64 : vector<8xf32> to vector<8x1xf32>
    %66 = arith.truncf %63 : vector<8x8xf32> to vector<8x8xbf16>
    %cst_45 = arith.constant dense<0.000000e+00> : vector<8x8xf32>
    %67 = tpu.matmul %66, %55, %cst_45 {dimension_numbers = #tpu.dot_dimension_numbers<[1], [0], [0], [1], [0, 0, 1, 1], [], []>} : vector<8x8xbf16>, vector<8x8xbf16>, vector<8x8xf32> -> vector<8x8xf32>
    %68 = tpu.reciprocal %65 {approx = true} : vector<8x1xf32> -> vector<8x1xf32>
    %69 = vector.broadcast %68 : vector<8x1xf32> to vector<8x8xf32>
    %70 = arith.mulf %67, %69 : vector<8x8xf32>
    %71 = arith.truncf %70 : vector<8x8xf32> to vector<8x8xbf16>
    %c1_46 = arith.constant 1 : index
    %c0_47 = arith.constant 0 : index
    %c0_48 = arith.constant 0 : index
    %72 = vector.load %arg12[%c1_46, %c0_47, %c0_48] : memref<4x8x32xbf16, #tpu.memory_space<vmem>>, vector<1x8x32xbf16>
    %73 = vector.shape_cast %72 : vector<1x8x32xbf16> to vector<8x32xbf16>
    %cst_49 = arith.constant dense<0.000000e+00> : vector<8x32xf32>
    %74 = tpu.matmul %71, %73, %cst_49 {dimension_numbers = #tpu.dot_dimension_numbers<[1], [0], [0], [1], [0, 0, 1, 1], [], []>} : vector<8x8xbf16>, vector<8x32xbf16>, vector<8x32xf32> -> vector<8x32xf32>
    %75 = arith.addf %43, %74 : vector<8x32xf32>
    %c2 = arith.constant 2 : index
    %c0_50 = arith.constant 0 : index
    %c0_51 = arith.constant 0 : index
    %76 = vector.load %arg6[%c2, %c0_50, %c0_51] : memref<4x32x8xbf16, #tpu.memory_space<vmem>>, vector<1x32x8xbf16>
    %77 = vector.shape_cast %76 : vector<1x32x8xbf16> to vector<32x8xbf16>
    %cst_52 = arith.constant dense<0.000000e+00> : vector<8x8xf32>
    %78 = tpu.matmul %4, %77, %cst_52 {dimension_numbers = #tpu.dot_dimension_numbers<[1], [0], [0], [1], [0, 0, 1, 1], [], []>} : vector<8x32xbf16>, vector<32x8xbf16>, vector<8x8xf32> -> vector<8x8xf32>
    %c2_53 = arith.constant 2 : index
    %c0_54 = arith.constant 0 : index
    %c0_55 = arith.constant 0 : index
    %79 = vector.load %arg7[%c2_53, %c0_54, %c0_55] : memref<4x1x8xf32, #tpu.memory_space<vmem>>, vector<1x1x8xf32>
    %80 = vector.shape_cast %79 : vector<1x1x8xf32> to vector<1x8xf32>
    %81 = vector.broadcast %80 : vector<1x8xf32> to vector<8x8xf32>
    %82 = arith.addf %78, %81 : vector<8x8xf32>
    %83 = arith.truncf %82 : vector<8x8xf32> to vector<8x8xbf16>
    %c2_56 = arith.constant 2 : index
    %c0_57 = arith.constant 0 : index
    %c0_58 = arith.constant 0 : index
    %84 = vector.load %arg15[%c2_56, %c0_57, %c0_58] : memref<4x8x8xbf16, #tpu.memory_space<vmem>>, vector<1x8x8xbf16>
    %85 = vector.shape_cast %84 : vector<1x8x8xbf16> to vector<8x8xbf16>
    %c2_59 = arith.constant 2 : index
    %c0_60 = arith.constant 0 : index
    %c0_61 = arith.constant 0 : index
    %86 = vector.load %arg16[%c2_59, %c0_60, %c0_61] : memref<4x8x8xbf16, #tpu.memory_space<vmem>>, vector<1x8x8xbf16>
    %87 = vector.shape_cast %86 : vector<1x8x8xbf16> to vector<8x8xbf16>
    %cst_62 = arith.constant dense<0.000000e+00> : vector<8x8xf32>
    %88 = tpu.matmul %83, %85, %cst_62 {dimension_numbers = #tpu.dot_dimension_numbers<[1], [1], [0], [0], [0, 0, 1, 0], [], []>} : vector<8x8xbf16>, vector<8x8xbf16>, vector<8x8xf32> -> vector<8x8xf32>
    %cst_63 = arith.constant -1.000000e+09 : f32
    %89 = vector.broadcast %cst_63 : f32 to vector<8x8xf32>
    %90 = arith.select %10, %89, %88 : vector<8x8xi1>, vector<8x8xf32>
    %cst_64 = arith.constant dense<0xFF800000> : vector<8xf32>
    %91 = vector.multi_reduction <maximumf>, %90, %cst_64 [1] : vector<8x8xf32> to vector<8xf32>
    %92 = vector.shape_cast %91 : vector<8xf32> to vector<8x1xf32>
    %93 = vector.broadcast %92 : vector<8x1xf32> to vector<8x8xf32>
    %94 = arith.subf %90, %93 : vector<8x8xf32>
    %95 = math.exp %94 : vector<8x8xf32>
    %cst_65 = arith.constant dense<0.000000e+00> : vector<8xf32>
    %96 = vector.multi_reduction <add>, %95, %cst_65 [1] : vector<8x8xf32> to vector<8xf32>
    %97 = vector.shape_cast %96 : vector<8xf32> to vector<8x1xf32>
    %98 = arith.truncf %95 : vector<8x8xf32> to vector<8x8xbf16>
    %cst_66 = arith.constant dense<0.000000e+00> : vector<8x8xf32>
    %99 = tpu.matmul %98, %87, %cst_66 {dimension_numbers = #tpu.dot_dimension_numbers<[1], [0], [0], [1], [0, 0, 1, 1], [], []>} : vector<8x8xbf16>, vector<8x8xbf16>, vector<8x8xf32> -> vector<8x8xf32>
    %100 = tpu.reciprocal %97 {approx = true} : vector<8x1xf32> -> vector<8x1xf32>
    %101 = vector.broadcast %100 : vector<8x1xf32> to vector<8x8xf32>
    %102 = arith.mulf %99, %101 : vector<8x8xf32>
    %103 = arith.truncf %102 : vector<8x8xf32> to vector<8x8xbf16>
    %c2_67 = arith.constant 2 : index
    %c0_68 = arith.constant 0 : index
    %c0_69 = arith.constant 0 : index
    %104 = vector.load %arg12[%c2_67, %c0_68, %c0_69] : memref<4x8x32xbf16, #tpu.memory_space<vmem>>, vector<1x8x32xbf16>
    %105 = vector.shape_cast %104 : vector<1x8x32xbf16> to vector<8x32xbf16>
    %cst_70 = arith.constant dense<0.000000e+00> : vector<8x32xf32>
    %106 = tpu.matmul %103, %105, %cst_70 {dimension_numbers = #tpu.dot_dimension_numbers<[1], [0], [0], [1], [0, 0, 1, 1], [], []>} : vector<8x8xbf16>, vector<8x32xbf16>, vector<8x32xf32> -> vector<8x32xf32>
    %107 = arith.addf %75, %106 : vector<8x32xf32>
    %c3 = arith.constant 3 : index
    %c0_71 = arith.constant 0 : index
    %c0_72 = arith.constant 0 : index
    %108 = vector.load %arg6[%c3, %c0_71, %c0_72] : memref<4x32x8xbf16, #tpu.memory_space<vmem>>, vector<1x32x8xbf16>
    %109 = vector.shape_cast %108 : vector<1x32x8xbf16> to vector<32x8xbf16>
    %cst_73 = arith.constant dense<0.000000e+00> : vector<8x8xf32>
    %110 = tpu.matmul %4, %109, %cst_73 {dimension_numbers = #tpu.dot_dimension_numbers<[1], [0], [0], [1], [0, 0, 1, 1], [], []>} : vector<8x32xbf16>, vector<32x8xbf16>, vector<8x8xf32> -> vector<8x8xf32>
    %c3_74 = arith.constant 3 : index
    %c0_75 = arith.constant 0 : index
    %c0_76 = arith.constant 0 : index
    %111 = vector.load %arg7[%c3_74, %c0_75, %c0_76] : memref<4x1x8xf32, #tpu.memory_space<vmem>>, vector<1x1x8xf32>
    %112 = vector.shape_cast %111 : vector<1x1x8xf32> to vector<1x8xf32>
    %113 = vector.broadcast %112 : vector<1x8xf32> to vector<8x8xf32>
    %114 = arith.addf %110, %113 : vector<8x8xf32>
    %115 = arith.truncf %114 : vector<8x8xf32> to vector<8x8xbf16>
    %c3_77 = arith.constant 3 : index
    %c0_78 = arith.constant 0 : index
    %c0_79 = arith.constant 0 : index
    %116 = vector.load %arg15[%c3_77, %c0_78, %c0_79] : memref<4x8x8xbf16, #tpu.memory_space<vmem>>, vector<1x8x8xbf16>
    %117 = vector.shape_cast %116 : vector<1x8x8xbf16> to vector<8x8xbf16>
    %c3_80 = arith.constant 3 : index
    %c0_81 = arith.constant 0 : index
    %c0_82 = arith.constant 0 : index
    %118 = vector.load %arg16[%c3_80, %c0_81, %c0_82] : memref<4x8x8xbf16, #tpu.memory_space<vmem>>, vector<1x8x8xbf16>
    %119 = vector.shape_cast %118 : vector<1x8x8xbf16> to vector<8x8xbf16>
    %cst_83 = arith.constant dense<0.000000e+00> : vector<8x8xf32>
    %120 = tpu.matmul %115, %117, %cst_83 {dimension_numbers = #tpu.dot_dimension_numbers<[1], [1], [0], [0], [0, 0, 1, 0], [], []>} : vector<8x8xbf16>, vector<8x8xbf16>, vector<8x8xf32> -> vector<8x8xf32>
    %cst_84 = arith.constant -1.000000e+09 : f32
    %121 = vector.broadcast %cst_84 : f32 to vector<8x8xf32>
    %122 = arith.select %10, %121, %120 : vector<8x8xi1>, vector<8x8xf32>
    %cst_85 = arith.constant dense<0xFF800000> : vector<8xf32>
    %123 = vector.multi_reduction <maximumf>, %122, %cst_85 [1] : vector<8x8xf32> to vector<8xf32>
    %124 = vector.shape_cast %123 : vector<8xf32> to vector<8x1xf32>
    %125 = vector.broadcast %124 : vector<8x1xf32> to vector<8x8xf32>
    %126 = arith.subf %122, %125 : vector<8x8xf32>
    %127 = math.exp %126 : vector<8x8xf32>
    %cst_86 = arith.constant dense<0.000000e+00> : vector<8xf32>
    %128 = vector.multi_reduction <add>, %127, %cst_86 [1] : vector<8x8xf32> to vector<8xf32>
    %129 = vector.shape_cast %128 : vector<8xf32> to vector<8x1xf32>
    %130 = arith.truncf %127 : vector<8x8xf32> to vector<8x8xbf16>
    %cst_87 = arith.constant dense<0.000000e+00> : vector<8x8xf32>
    %131 = tpu.matmul %130, %119, %cst_87 {dimension_numbers = #tpu.dot_dimension_numbers<[1], [0], [0], [1], [0, 0, 1, 1], [], []>} : vector<8x8xbf16>, vector<8x8xbf16>, vector<8x8xf32> -> vector<8x8xf32>
    %132 = tpu.reciprocal %129 {approx = true} : vector<8x1xf32> -> vector<8x1xf32>
    %133 = vector.broadcast %132 : vector<8x1xf32> to vector<8x8xf32>
    %134 = arith.mulf %131, %133 : vector<8x8xf32>
    %135 = arith.truncf %134 : vector<8x8xf32> to vector<8x8xbf16>
    %c3_88 = arith.constant 3 : index
    %c0_89 = arith.constant 0 : index
    %c0_90 = arith.constant 0 : index
    %136 = vector.load %arg12[%c3_88, %c0_89, %c0_90] : memref<4x8x32xbf16, #tpu.memory_space<vmem>>, vector<1x8x32xbf16>
    %137 = vector.shape_cast %136 : vector<1x8x32xbf16> to vector<8x32xbf16>
    %cst_91 = arith.constant dense<0.000000e+00> : vector<8x32xf32>
    %138 = tpu.matmul %135, %137, %cst_91 {dimension_numbers = #tpu.dot_dimension_numbers<[1], [0], [0], [1], [0, 0, 1, 1], [], []>} : vector<8x8xbf16>, vector<8x32xbf16>, vector<8x32xf32> -> vector<8x32xf32>
    %139 = arith.addf %107, %138 : vector<8x32xf32>
    %c0_92 = arith.constant 0 : index
    %c0_93 = arith.constant 0 : index
    %140 = vector.load %arg13[%c0_92, %c0_93] : memref<1x32xf32, #tpu.memory_space<vmem>>, vector<1x32xf32>
    %141 = vector.broadcast %140 : vector<1x32xf32> to vector<8x32xf32>
    %142 = arith.addf %139, %141 : vector<8x32xf32>
    %c0_94 = arith.constant 0 : index
    %c0_95 = arith.constant 0 : index
    %c0_96 = arith.constant 0 : index
    %143 = vector.load %arg14[%c0_94, %c0_95, %c0_96] : memref<1x8x32xf32, #tpu.memory_space<vmem>>, vector<1x8x32xf32>
    %144 = vector.shape_cast %143 : vector<1x8x32xf32> to vector<8x32xf32>
    %145 = vector.shape_cast %142 : vector<8x32xf32> to vector<1x8x32xf32>
    tpu.vector_store %arg14[%c0_94, %c0_95, %c0_96], %145 {strides = array<i32>} : memref<1x8x32xf32, #tpu.memory_space<vmem>>, vector<1x8x32xf32>,
    return
  }
  func.func @transform_0(%arg0: i32, %arg1: i32) -> (i32, i32, i32) {
    %c0_i32 = arith.constant 0 : i32
    %c0_i32_0 = arith.constant 0 : i32
    return %arg0, %arg1, %c0_i32 : i32, i32, i32
  }
  func.func @transform_1(%arg0: i32, %arg1: i32) -> (i32, i32, i32) {
    %c0_i32 = arith.constant 0 : i32
    %c0_i32_0 = arith.constant 0 : i32
    %c0_i32_1 = arith.constant 0 : i32
    return %arg0, %c0_i32, %c0_i32_0 : i32, i32, i32
  }
  func.func @transform_2(%arg0: i32, %arg1: i32) -> (i32, i32, i32) {
    %c0_i32 = arith.constant 0 : i32
    %c0_i32_0 = arith.constant 0 : i32
    %c0_i32_1 = arith.constant 0 : i32
    return %arg0, %c0_i32, %c0_i32_0 : i32, i32, i32
  }
  func.func @transform_3(%arg0: i32, %arg1: i32) -> (i32, i32, i32) {
    %c0_i32 = arith.constant 0 : i32
    %c0_i32_0 = arith.constant 0 : i32
    %c0_i32_1 = arith.constant 0 : i32
    return %arg0, %c0_i32, %c0_i32_0 : i32, i32, i32
  }
  func.func @transform_4(%arg0: i32, %arg1: i32) -> (i32, i32, i32) {
    %c0_i32 = arith.constant 0 : i32
    %c0_i32_0 = arith.constant 0 : i32
    %c0_i32_1 = arith.constant 0 : i32
    %c0_i32_2 = arith.constant 0 : i32
    return %c0_i32, %c0_i32_0, %c0_i32_1 : i32, i32, i32
  }
  func.func @transform_5(%arg0: i32, %arg1: i32) -> (i32, i32, i32) {
    %c0_i32 = arith.constant 0 : i32
    %c0_i32_0 = arith.constant 0 : i32
    %c0_i32_1 = arith.constant 0 : i32
    %c0_i32_2 = arith.constant 0 : i32
    return %c0_i32, %c0_i32_0, %c0_i32_1 : i32, i32, i32
  }
  func.func @transform_6(%arg0: i32, %arg1: i32) -> (i32, i32, i32) {
    %c0_i32 = arith.constant 0 : i32
    %c0_i32_0 = arith.constant 0 : i32
    %c0_i32_1 = arith.constant 0 : i32
    %c0_i32_2 = arith.constant 0 : i32
    return %c0_i32, %c0_i32_0, %c0_i32_1 : i32, i32, i32
  }
  func.func @transform_7(%arg0: i32, %arg1: i32) -> (i32, i32, i32) {
    %c0_i32 = arith.constant 0 : i32
    %c0_i32_0 = arith.constant 0 : i32
    %c0_i32_1 = arith.constant 0 : i32
    %c0_i32_2 = arith.constant 0 : i32
    return %c0_i32, %c0_i32_0, %c0_i32_1 : i32, i32, i32
  }
  func.func @transform_8(%arg0: i32, %arg1: i32) -> (i32, i32, i32) {
    %c0_i32 = arith.constant 0 : i32
    %c0_i32_0 = arith.constant 0 : i32
    %c0_i32_1 = arith.constant 0 : i32
    %c0_i32_2 = arith.constant 0 : i32
    return %c0_i32, %c0_i32_0, %c0_i32_1 : i32, i32, i32
  }
  func.func @transform_9(%arg0: i32, %arg1: i32) -> (i32, i32, i32) {
    %c0_i32 = arith.constant 0 : i32
    %c0_i32_0 = arith.constant 0 : i32
    %c0_i32_1 = arith.constant 0 : i32
    %c0_i32_2 = arith.constant 0 : i32
    return %c0_i32, %c0_i32_0, %c0_i32_1 : i32, i32, i32
  }
  func.func @transform_10(%arg0: i32, %arg1: i32) -> (i32, i32, i32) {
    %c0_i32 = arith.constant 0 : i32
    %c0_i32_0 = arith.constant 0 : i32
    %c0_i32_1 = arith.constant 0 : i32
    %c0_i32_2 = arith.constant 0 : i32
    return %c0_i32, %c0_i32_0, %c0_i32_1 : i32, i32, i32
  }
  func.func @transform_11(%arg0: i32, %arg1: i32) -> (i32, i32) {
    %c0_i32 = arith.constant 0 : i32
    %c0_i32_0 = arith.constant 0 : i32
    %c0_i32_1 = arith.constant 0 : i32
    return %c0_i32, %c0_i32_0 : i32, i32
  }
  func.func @transform_12(%arg0: i32, %arg1: i32) -> (i32, i32, i32) {
    %c0_i32 = arith.constant 0 : i32
    %c0_i32_0 = arith.constant 0 : i32
    return %arg0, %arg1, %c0_i32 : i32, i32, i32
  }
}

</mosaic_0001>

<bundles_post_ra>
// kernel: tpu_custom_call.1
= control target key start
LH: loop header
LB: loop body
LE: loop exit
PB: predicated region body
PF: predicated region fallthrough
CT: control target
= control target key end

     0   :  { %17 = vsyncpa [#allocation5], 0  ;;  %s2134_s0 = inlined_call_operand.vmem [shape: bf16[2,8,32], index: 0, kind: input, shape index: {}]   ;;  %s2135_s1 = inlined_call_operand.vmem [shape: bf16[2,8,32], index: 1, kind: input, shape index: {}]   ;;  %s2136_s2 = inlined_call_operand.vmem [shape: bf16[2,8,32], index: 2, kind: input, shape index: {}]   ;;  %s2137_s3 = inlined_call_operand.vmem [shape: f32[2,1,8], index: 3, kind: input, shape index: {}]   ;;  %s2138_s4 = inlined_call_operand.vmem [shape: bf16[4,32,8], index: 4, kind: input, shape index: {}]   ;;  %s2139_s5 = inlined_call_operand.vmem [shape: f32[4,1,8], index: 5, kind: input, shape index: {}]   ;;  %s2140_s6 = inlined_call_operand.vmem [shape: bf16[4,32,8], index: 6, kind: input, shape index: {}]   ;;  %s2141_s7 = inlined_call_operand.vmem [shape: f32[4,1,8], index: 7, kind: input, shape index: {}]   ;;  %s2142_s8 = inlined_call_operand.vmem [shape: bf16[4,32,8], index: 8, kind: input, shape index: {}]   ;;  %s2143_s9 = inlined_call_operand.vmem [shape: f32[4,1,8], index: 9, kind: input, shape index: {}]   ;;  %s2144_s10 = inlined_call_operand.vmem [shape: bf16[4,8,32], index: 10, kind: input, shape index: {}]   ;;  %s2145_s11 = inlined_call_operand.vmem [shape: f32[1,32], index: 11, kind: input, shape index: {}]   ;;  %s2146_s12 = inlined_call_operand.hbm [shape: f32[2,8,32], index: 12, kind: output, shape index: {}]  }
   0x1   :  { %19 = vsyncpa [#allocation5 + $0x1], 0  ;;  %s1819_s21 = smov 0   ;;  %s1821_s22 = smov 0  }
   0x2   :  { %s1823_s23 = smov 0   ;;  %s1825_s24 = smov 0  }
   0x3   :  { %s1827_s25 = smov 0   ;;  %s1829_s26 = smov 0  }
   0x4 LB: > { %2152 = sst [smem:[#allocation7_spill]] %s1731_s21  ;;  %s1383_s27 = sadd.s32 4294967295, %s1751_s26   ;;  %s1751_s26 = sphi %s1829_s26, %s25_s26   ;;  %s1747_s25 = sphi %s1827_s25, %s2167_s25   ;;  %s1743_s24 = sphi %s1825_s24, %s2166_s24   ;;  %s1739_s23 = sphi %s1823_s23, %s2165_s23   ;;  %s1735_s22 = sphi %s1821_s22, %s2169_s22   ;;  %s1731_s21 = sphi %s1819_s21, %s2168_s21  }
   0x5   : > { %2153 = sst [smem:[#allocation8_spill]] %s1739_s23  ;;  %s1384_s28 = sadd.s32 4294967294, %s1751_s26  }
   0x6   : > { %2154 = sst [smem:[#allocation9_spill]] %s1747_s25  ;;  %s37_s29 = sadd.s32 1, %s1747_s25 }
   0x7   : > { %s320_s30 = sadd.s32 1, %s1739_s23  ;;  %p39_p0 = scmp.ge.s32.totalorder %s37_s29, 2 }
   0x8   : > { %p330_p1 = scmp.ne.s32.totalorder %s1739_s23, %s1735_s22  ;;  %p331_p2 = scmp.eq.s32.totalorder %s1383_s27, 1 }
   0x9   : > { %p336_p3 = scmp.ne.s32.totalorder %s1735_s22, %s1731_s21  ;;  %s2171_s29 = smov (%p39_p0, %s37_s29), 0 }
   0xa   : > { %2155 = sst [smem:[#allocation10_spill]] %s2171_s29  ;;  %p1859_p4 = por %p331_p2, %p330_p1 }
   0xb   : > { %p337_p5 = scmp.eq.s32.totalorder %s1384_s28, 1  ;;  %s315_s14 = ssub.s32 %s1747_s25, %s2171_s29 }
   0xc   : > { %p1387_p6 = scmp.ge.s32.totalorder %s1751_s26, 1  ;;  %p318_p7 = scmp.eq.s32.totalorder %s315_s14, 0 }
   0xd   : > { %p1866_p8 = por %p337_p5, %p336_p3  ;;  %p409_p9 = scmp.lt.s32.totalorder %s1751_s26, 3 }
   0xe   : > { %s1872_s16 = scalar_select %p318_p7, %s1739_s23, %s320_s30  }
   0xf   : > { %s2157_s15 = scalar_select %p1866_p8, 1, 0 }
  0x10   : > { %2159 = sst [smem:[#allocation12_spill]] %s1872_s16  ;;  %p410_p10 = pnand %p1387_p6, %p409_p9 }
  0x11   : > { %2158 = sst [smem:[#allocation11_spill]] %s2157_s15  ;;  %p464_p11 = scmp.lt.s32.totalorder (!%p410_p10), %s1743_s24, 1 }
  0x12   : > { %413 = sbr.rel (%p410_p10) target bundleno = 1022 (0x3fe), region = 68 }
  0x17   : > { %v1569_v0 = vld [vmem:[%s2140_s6 + $0x18] sm:$0xff]  ;;  %v1565_v2 = vld [vmem:[%s2140_s6 + $0x8] sm:$0xff]  ;;  %v1568_v3 = vld [vmem:[%s2140_s6 + $0x10] sm:$0xff]  ;;  %s1891_s18 = scalar_select %p464_p11, %s1743_s24, 1  ;;  %vm509_vm0 = vcmask 261120   ;;  %vm563_vm1 = vcmask 60416  }
  0x18   : > { %v1571_v1 = vld [vmem:[%s2142_s8 + $0x18] sm:$0xff]  ;;  %595 = vmatpush.bf16.msra.mxu2 %v1569_v0  ;;  %v1570_v4 = vld [vmem:[%s2142_s8 + $0x10] sm:$0xff]  ;;  %519 = vmatpush.bf16.msra.mxu0 %v1565_v2  ;;  %v1564_v6 = vld [vmem:[%s2140_s6] sm:$0xff]  ;;  %vm841_vm2 = vcmask 64512   ;;  %vm875_vm3 = vcmask 1043456  }
  0x19   : > { %630 = vmatpush.bf16.msra.mxu3 %v1571_v1  ;;  %v1579_v5 = vld [vmem:[%s2142_s8 + $0x38] sm:$0xff]  ;;  %s1900_s25 = sshll.u32 %s1891_s18, 2  ;;  %v1573_v7 = vld [vmem:[%s2140_s6 + $0x28] sm:$0xff]  ;;  %v1578_v8 = vld [vmem:[%s2142_s8 + $0x30] sm:$0xff]  ;;  %s481_s30 = scalar_lea.vmem %s2137_s3, %s1891_s18 }
  0x1a   : > { %s474_s16 = scalar_lea.vmem %s2135_s1, %s1900_s25  ;;  %s478_s19 = scalar_lea.vmem %s2136_s2, %s1900_s25  ;;  %v1583_v10 = vld [vmem:[%s2138_s4 + $0x18] sm:$0xff]  ;;  %v1572_v11 = vld [vmem:[%s2140_s6 + $0x20] sm:$0xff]  ;;  %v1581_v13 = vld [vmem:[%s2138_s4 + $0x8] sm:$0xff] }
  0x1b   : > { %v488_v9 = vld [vmem:[%s478_s19] sm:$0xf]  ;;  %v1567_v14 = vld [vmem:[%s2142_s8 + $0x8] sm:$0xff]  ;;  %v1582_v15 = vld [vmem:[%s2138_s4 + $0x10] sm:$0xff]  ;;  %s470_s21 = scalar_lea.vmem %s2134_s0, %s1900_s25  ;;  %s461_s18 = sand.u32 1, %s1735_s22  }
  0x1c   : > { %596 = vmatpush.bf16.msra.mxu2 %v1568_v3  ;;  %v1922_v12 = vld [vmem:[%s474_s16] sm:$0xf]  ;;  %520 = vmatpush.bf16.msra.mxu0 %v1564_v6  ;;  %v1575_v19 = vld [vmem:[%s2142_s8 + $0x28] sm:$0xff]  ;;  %v1577_v40 = vld [vmem:[%s2140_s6 + $0x38] sm:$0xff]  ;;  %s1388_s14 = sshll.u32 %s461_s18, 3 }
  0x1d   : > { %631 = vmatpush.bf16.msra.mxu3 %v1570_v4  ;;  %v1580_v16 = vld [vmem:[%s2138_s4] sm:$0xff]  ;;  %555 = vmatpush.bf16.msra.mxu1 %v1567_v14  ;;  %v1576_v6 = vld [vmem:[%s2140_s6 + $0x30] sm:$0xff]  ;;  %s463_s17 = scalar_lea.vmem [#allocation4], %s1388_s14  ;;  %s1693_s14 = scalar_lea.hbm %s2146_s12, 16 }
  0x1e   : > { %v1566_v17 = vld [vmem:[%s2142_s8] sm:$0xff]  ;;  %s1276_s19 = sshll.u32 %s463_s17, 4  ;;  %s1277_s19 = int_to_ptr.vmem [resolvable:$true] %s1276_s19 }
  0x1f   : > { %1423 = vmatmul.msk.bf16.vlgmr.msra.gmra.mxu2 %vm509_vm0, %v1922_v12  ;;  %1400 = vmatmul.msk.bf16.vlgmr.msra.gmra.mxu0 %vm509_vm0, %v1922_v12  ;;  %v1952_v18 = vld [vmem:[%s470_s21] sm:$0xf]  ;;  %s1561_s21 = sshll.u32 %s1743_s24, 3  ;;  %s1263_s24 = scalar_lea.sflag [#allocation5], %s461_s18 }
  0x20   : > { %671 = vmatpush.bf16.msrb.mxu0 %v1573_v7  ;;  %1437 = vmatmul.msk.bf16.vlgmr.msra.gmra.mxu3 %vm509_vm0, %v488_v9  ;;  %v1574_v20 = vld [vmem:[%s2142_s8 + $0x20] sm:$0xff]  ;;  %s1274_s29 = scalar_lea.hbm %s2146_s12, %s1561_s21 }
  0x21   : > { %782 = vmatpush.bf16.msrb.mxu3 %v1579_v5  ;;  %556 = vmatpush.bf16.msra.mxu1 %v1566_v17  ;;  %v1644_v21 = vld [vmem:[%s2141_s7] ss:$0 sm:$0xff]  ;;  %v1645_v24 = vld [vmem:[%s2141_s7 + $0x1] ss:$0 sm:$0xff]  ;;  %v1648_v38 = vld [vmem:[%s2141_s7 + $0x2] ss:$0 sm:$0xff] }
  0x22   : > { %v1646_v25 = vld [vmem:[%s2143_s9 + $0x1] ss:$0 sm:$0xff]  ;;  %v1651_v39 = vld [vmem:[%s2143_s9] ss:$0 sm:$0xff]  ;;  %747 = vmatpush.bf16.msrb.mxu2 %v1577_v40  ;;  %v1647_v48 = vld [vmem:[%s2143_s9 + $0x3] ss:$0 sm:$0xff] }
  0x23   : > { %v1650_v58 = vld [vmem:[%s2139_s5] ss:$0 sm:$0xff]  ;;  %v1649_v62 = vld [vmem:[%s2139_s5 + $0x1] ss:$0 sm:$0xff]  ;;  %v1652_v7 = vld [vmem:[%s2143_s9 + $0x2] ss:$0 sm:$0xff] }
  0x24   : > { %672 = vmatpush.bf16.msrb.mxu0 %v1572_v11  ;;  %1409 = vmatmul.msk.bf16.vlgmr.msra.gmra.mxu1 %vm509_vm0, %v488_v9  ;;  %v1584_v14 = vld [vmem:[%s2138_s4 + $0x20] sm:$0xff]  ;;  %v1753_v17 = vmov 0   ;;  %s1278_s20 = sshll.u32 %s1274_s29, 4  ;;  %s1279_s20 = int_to_ptr.hbm [resolvable:$true] %s1278_s20 }
  0x25   : > { %783 = vmatpush.bf16.msrb.mxu3 %v1578_v8  ;;  %706 = vmatpush.bf16.msrb.mxu1 %v1575_v19  ;;  %s1687_s27 = sshra.s32 %s1279_s20, 4  ;;  %s1688_s27 = int_to_ptr.hbm [resolvable:$true] %s1687_s27 }
  0x26   : > { %748 = vmatpush.bf16.msrb.mxu2 %v1576_v6  ;;  %s1689_s28 = scalar_lea.hbm %s1688_s27, 8  ;;  %p1694_p1 = scmp.lt.s32.totalorder %s1688_s27, %s2146_s12 }
  0x27   : > { %p1690_p12 = scmp.ne.s32.totalorder %s1688_s27, %s1689_s28  ;;  %p1695_p2 = scmp.lt.s32.totalorder %s1693_s14, %s1689_s28 }
  0x28   : > { %831 = vmatpush.bf16.msra.mxu0 %v1581_v13  ;;  %v1585_v13 = vld [vmem:[%s2138_s4 + $0x28] sm:$0xff] }
  0x29   : > { %924 = vmatpush.bf16.msra.mxu3 %v1583_v10  ;;  %707 = vmatpush.bf16.msrb.mxu1 %v1574_v20  ;;  %p1691_p13 = pnand %p1690_p12, %p1859_p4  ;;  %p1696_p3 = por %p1695_p2, %p1694_p1 }
  0x2b   : > { %p1692_p0 = pneg %p1691_p13 }
  0x2c   : > { %832 = vmatpush.bf16.msra.mxu0 %v1580_v16  ;;  %v796_v16 = vld [vmem:[%s481_s30] sm:$0x1] }
  0x2d   : > { %925 = vmatpush.bf16.msra.mxu3 %v1582_v15  ;;  %v1586_v15 = vld [vmem:[%s2138_s4 + $0x30] sm:$0xff]  ;;  %vm797_vm4 = vcmp.eq.f32.partialorder %v796_v16, 0.0  ;;  %p1697_p5 = pnand %p1696_p3, %p1692_p0 }
  0x2e   : > { %v798_v19 = vsel %vm797_vm4, 1, %v1753_v17 }
  0x2f   : > { %1451 = vmatmul.msk.bf16.vlgmr.msrb.gmra.mxu0 %vm509_vm0, %v1922_v12  ;;  %1479 = vmatmul.msk.bf16.vlgmr.msrb.gmra.mxu2 %vm509_vm0, %v1922_v12  ;;  %v1587_v12 = vld [vmem:[%s2138_s4 + $0x38] sm:$0xff]  ;;  %v799_v20 = vperm.slane %v798_v19, 0 }
  0x30   : > { %1493 = vmatmul.msk.bf16.vlgmr.msrb.gmra.mxu3 %vm509_vm0, %v488_v9 }
  0x31   : > { %vm2033_vm5 = vcmp.eq.s32.totalorder %v799_v20, 1  ;;  %v895_v20 = vld [vmem:[%s2144_s10] sm:$0xf] }
  0x34   : > { %1465 = vmatmul.msk.bf16.vlgmr.msrb.gmra.mxu1 %vm509_vm0, %v488_v9 }
  0x3f   : > { %1502 = vmatmul.msk.bf16.vlgmr.msra.gmra.mxu0 %vm509_vm0, %v1952_v18 }
  0x40   : > { %1518 = vmatmul.msk.bf16.vlgmr.msra.gmra.mxu3 %vm509_vm0, %v1952_v18 }
  0x9c   : > { %v522_v22 = vpop.f32.mrf.mxu0 }
  0x9d   : > { %v523_v23 = vadd.f32 %v1644_v21, %v522_v22 }
  0x9f   : > { %v562_v26 = vpack.c.bf16 %v523_v23, %v523_v23 }
  0xa1   : > { %564 = vst.msk [vmem:[#allocation2] sm:$0xf] %vm563_vm1, %v562_v26  ;;  %v558_v41 = vpop.f32.mrf.mxu1 }
  0xa2   : > { %v598_v27 = vpop.f32.mrf.mxu2  ;;  %v559_v42 = vadd.f32 %v1651_v39, %v558_v41 }
  0xa3   : > { %v633_v28 = vpop.f32.mrf.mxu3  ;;  %v599_v29 = vadd.f32 %v1645_v24, %v598_v27 }
  0xa4   : > { %v634_v30 = vadd.f32 %v1646_v25, %v633_v28  ;;  %v524_v33 = vpop.f32.mrf.mxu0  ;;  %v565_v46 = vpack.c.bf16 %v559_v42, %v559_v42 }
  0xa5   : > { %v637_v31 = vpack.c.bf16 %v599_v29, %v599_v29 }
  0xa6   : > { %v640_v32 = vpack.c.bf16 %v634_v30, %v634_v30  ;;  %566 = vst.msk [vmem:[#allocation3] sm:$0xf] %vm563_vm1, %v565_v46 }
  0xa7   : > { %639 = vst.msk [vmem:[#allocation2 + $0x4] sm:$0xf] %vm563_vm1, %v637_v31 }
  0xa8   : > { %642 = vst.msk [vmem:[#allocation3 + $0x4] sm:$0xf] %vm563_vm1, %v640_v32  ;;  %v839_v34 = vld [vmem:[#allocation2] sm:$0xf] }
  0xa9   : > { %v846_v37 = vsel %vm841_vm2, %v839_v34, 0  ;;  %v560_v54 = vpop.f32.mrf.mxu1 }
  0xaa   : > { %v600_v35 = vpop.f32.mrf.mxu2  ;;  %855 = vmatpush.bf16.xpose.msra.mxu1 %v846_v37  ;;  %v1654_v54 = vld [vmem:[%s2139_s5 + $0x2] ss:$0 sm:$0xff] }
  0xab   : > { %v635_v36 = vpop.f32.mrf.mxu3 }
  0xac   : > { %v674_v43 = vpop.f32.mrf.mxu0 }
  0xad   : > { %v675_v45 = vadd.f32 %v1648_v38, %v674_v43  ;;  %v840_v34 = vld [vmem:[#allocation3] sm:$0xf] }
  0xae   : > { %v933_v44 = vld [vmem:[#allocation2 + $0x4] sm:$0xf]  ;;  %v877_v35 = vsel %vm875_vm3, %v840_v34, 0 }
  0xaf   : > { %v935_v47 = vld [vmem:[#allocation3 + $0x4] sm:$0xf]  ;;  %v940_v49 = vsel %vm841_vm2, %v933_v44, 0  ;;  %v713_v51 = vpack.c.bf16 %v675_v45, %v675_v45  ;;  %886 = vmatpush.bf16.msra.mxu2 %v877_v35 }
  0xb0   : > { %v970_v50 = vsel %vm875_vm3, %v935_v47, 0  ;;  %949 = vmatpush.bf16.xpose.msrb.mxu0 %v940_v49 }
  0xb1   : > { %715 = vst.msk [vmem:[#allocation2 + $0x8] sm:$0xf] %vm563_vm1, %v713_v51  ;;  %v709_v8 = vpop.f32.mrf.mxu1  ;;  %v1521_v51 = vld [vmem:[%s2144_s10 + $0x4] sm:$0xf] }
  0xb2   : > { %979 = vmatpush.bf16.msrb.mxu1 %v970_v50  ;;  %v710_v9 = vadd.f32 %v1652_v7, %v709_v8  ;;  %v750_v30 = vpop.f32.mrf.mxu2 }
  0xb3   : > { %v785_v52 = vpop.f32.mrf.mxu3 }
  0xb4   : > { %v786_v53 = vadd.f32 %v1647_v48, %v785_v52  ;;  %v676_v56 = vpop.f32.mrf.mxu0  ;;  %v716_v10 = vpack.c.bf16 %v710_v9, %v710_v9  ;;  %v994_v52 = vsel %vm875_vm3, %v1521_v51, 0 }
  0xb5   : > { %1003 = vmatpush.bf16.msrb.mxu2 %v994_v52 }
  0xb6   : > { %v792_v55 = vpack.c.bf16 %v786_v53, %v786_v53  ;;  %718 = vst.msk [vmem:[#allocation3 + $0x8] sm:$0xf] %vm563_vm1, %v716_v10 }
  0xb8   : > { %794 = vst.msk [vmem:[#allocation3 + $0xc] sm:$0xf] %vm563_vm1, %v792_v55  ;;  %v1065_v60 = vld [vmem:[#allocation2 + $0x8] sm:$0xf]  ;;  %1056 = vmatpush.bf16.msra.mxu0 %v1585_v13 }
  0xb9   : > { %v1072_v0 = vsel %vm841_vm2, %v1065_v60, 0  ;;  %v711_v11 = vpop.f32.mrf.mxu1  ;;  %v1655_v60 = vld [vmem:[%s2139_s5 + $0x3] ss:$0 sm:$0xff] }
  0xba   : > { %v752_v36 = vpop.f32.mrf.mxu2 }
  0xbb   : > { %v787_v57 = vpop.f32.mrf.mxu3 }
  0xbc   : > { %v834_v59 = vpop.f32.mrf.mxu0  ;;  %1057 = vmatpush.bf16.msra.mxu0 %v1584_v14 }
  0xbd   : > { %v835_v61 = vadd.f32 %v1650_v58, %v834_v59  ;;  %v1067_v53 = vld [vmem:[#allocation3 + $0x8] sm:$0xf] }
  0xbe   : > { %v1102_v57 = vsel %vm875_vm3, %v1067_v53, 0 }
  0xbf   : > { %v838_v63 = vpack.c.bf16 %v835_v61, %v835_v61 }
  0xc1   : > { %1503 = vmatmul.msk.bf16.vlgmr.msra.gmra.mxu1 %vm841_vm2, %v838_v63 }
  0xc2   : > { %1081 = vmatpush.bf16.xpose.msra.mxu1 %v1072_v0 }
  0xc3   : > { %v927_v1 = vpop.f32.mrf.mxu3 }
  0xc4   : > { %v928_v2 = vadd.f32 %v1649_v62, %v927_v1  ;;  %v836_v4 = vpop.f32.mrf.mxu0 }
  0xc6   : > { %v931_v3 = vpack.c.bf16 %v928_v2, %v928_v2 }
  0xc8   : > { %1519 = vmatmul.msk.bf16.vlgmr.msrb.gmra.mxu0 %vm841_vm2, %v931_v3  ;;  %v1181_v3 = vld [vmem:[#allocation3 + $0xc] sm:$0xf] }
  0xc9   : > { %1170 = vmatpush.bf16.msrb.mxu0 %v1587_v12 }
  0xcb   : > { %v929_v5 = vpop.f32.mrf.mxu3 }
  0xcc   : > { %v1216_v5 = vsel %vm875_vm3, %v1181_v3, 0 }
  0xcd   : > { %1171 = vmatpush.bf16.msrb.mxu0 %v1586_v15 }
  0xd8   : > { %1537 = vmatmul.msk.bf16.vlgmr.msra.gmra.mxu0 %vm509_vm0, %v1952_v18 }
  0xe8   : > { %1555 = vmatmul.msk.bf16.vlgmr.msrb.gmra.mxu0 %vm509_vm0, %v1952_v18  ;;  %v1653_v18 = vld [vmem:[%s2141_s7 + $0x3] ss:$0 sm:$0xff] }
  0xe9   : > { %v751_v31 = vadd.f32 %v1653_v18, %v750_v30 }
  0xeb   : > { %v789_v32 = vpack.c.bf16 %v751_v31, %v751_v31 }
  0xed   : > { %791 = vst.msk [vmem:[#allocation2 + $0xc] sm:$0xf] %vm563_vm1, %v789_v32 }
  0xf4   : > { %v1179_v44 = vld [vmem:[#allocation2 + $0xc] sm:$0xf] }
  0xf5   : > { %v1186_v50 = vsel %vm841_vm2, %v1179_v44, 0 }
 0x13e   : > { %v857_v21 = vpop.f32.mrf.mxu1 }
 0x13f   : > { %v861_v27 = vsel %vm2033_vm5, -1e+09, %v857_v21 }
 0x140   : > { %v862_v29 = vsel %vm841_vm2, %v861_v27, -inf }
 0x145   : > { %v951_v23 = vpop.f32.mrf.mxu0 }
 0x146   : > { %v955_v24 = vsel %vm2033_vm5, -1e+09, %v951_v23  ;;  %v859_v26 = vpop.f32.mrf.mxu1  ;;  %v1013_v23 = vsel %vm875_vm3, %v895_v20, 0 }
 0x147   : > { %v956_v25 = vsel %vm841_vm2, %v955_v24, -inf  ;;  %1022 = vmatpush.bf16.msrb.mxu3 %v1013_v23 }
 0x148   : > { %957 = vmax.xlane.f32.xlu0 %v956_v25 }
 0x14d   : > { %v953_v28 = vpop.f32.mrf.mxu0 }
 0x150   : > { %863 = vmax.xlane.f32.xlu0 %v862_v29 }
 0x155   : > { %v1059_v33 = vpop.f32.mrf.mxu0 }
 0x156   : > { %v1060_v58 = vadd.f32 %v1654_v54, %v1059_v33 }
 0x158   : > { %v1063_v59 = vpack.c.bf16 %v1060_v58, %v1060_v58 }
 0x15d   : > { %v1061_v37 = vpop.f32.mrf.mxu0 }
 0x165   : > { %v1173_v40 = vpop.f32.mrf.mxu0 }
 0x166   : > { %v1174_v61 = vadd.f32 %v1655_v60, %v1173_v40  ;;  %v1558_v40 = vld [vmem:[%s2144_s10 + $0xc] sm:$0xf]  ;;  %v1656_v60 = vld [vmem:[%s2145_s11] ss:$0 sm:$0xff] }
 0x168   : > { %v1177_v62 = vpack.c.bf16 %v1174_v61, %v1174_v61 }
 0x16d   : > { %v1175_v45 = vpop.f32.mrf.mxu0 }
 0x1bb   : > { %v958_v38 = vpop.xlane.xlu0 %957 }
 0x1bc   : > { %v959_v39 = vsub.f32 %v955_v24, %v958_v38  ;;  %v1540_v38 = vld [vmem:[%s2144_s10 + $0x8] sm:$0xf] }
 0x1be   : > { %v960_v41 = vmul.f32 1.442695, %v959_v39  ;;  %v1126_v39 = vsel %vm875_vm3, %v1540_v38, 0 }
 0x1bf   : > { %1135 = vmatpush.bf16.msra.mxu3 %v1126_v39 }
 0x1c0   : > { %1657 = vpow2.f32 %v960_v41  ;;  %v1240_v41 = vsel %vm875_vm3, %v1558_v40, 0 }
 0x1c3   : > { %v864_v42 = vpop.xlane.xlu0 %863 }
 0x1c4   : > { %v865_v43 = vsub.f32 %v861_v27, %v864_v42 }
 0x1c6   : > { %v1658_v46 = vpop.eup %1657  ;;  %v866_v47 = vmul.f32 1.442695, %v865_v43 }
 0x1c7   : > { %v965_v48 = vpack.c.bf16 %v1658_v46, %v1658_v46  ;;  %v962_v49 = vsel %vm841_vm2, %v1658_v46, 0.0 }
 0x1c8   : > { %1659 = vpow2.f32 %v866_v47  ;;  %963 = vadd.xlane.f32.xlu1 %v962_v49 }
 0x1c9   : > { %1520 = vmatmul.msk.bf16.vlgmr.msrb.gmra.mxu1 %vm841_vm2, %v965_v48 }
 0x1ca   : > { %1195 = vmatpush.bf16.xpose.msrb.mxu1 %v1186_v50 }
 0x1ce   : > { %v1660_v55 = vpop.eup %1659 }
 0x1cf   : > { %v871_v56 = vpack.c.bf16 %v1660_v55, %v1660_v55  ;;  %v868_v17 = vsel %vm841_vm2, %v1660_v55, 0.0 }
 0x1d1   : > { %1504 = vmatmul.msk.bf16.vlgmr.msra.gmra.mxu2 %vm841_vm2, %v871_v56 }
 0x1d2   : > { %1111 = vmatpush.bf16.msra.mxu2 %v1102_v57 }
 0x1d9   : > { %1538 = vmatmul.msk.bf16.vlgmr.msra.gmra.mxu1 %vm841_vm2, %v1063_v59 }
 0x1e9   : > { %1556 = vmatmul.msk.bf16.vlgmr.msrb.gmra.mxu1 %vm841_vm2, %v1177_v62 }
 0x23b   : > { %v964_v63 = vpop.xlane.xlu1 %963 }
 0x23c   : > { %1661 = vrcp.f32 %v964_v63 }
 0x242   : > { %v1662_v0 = vpop.eup %1661 }
 0x246   : > { %v981_v1 = vpop.f32.mrf.mxu1 }
 0x247   : > { %v986_v2 = vmul.f32 %v1662_v0, %v981_v1 }
 0x249   : > { %v987_v4 = vpack.c.bf16 %v986_v2, %v986_v2 }
 0x24b   : > { %1522 = vmatmul.msk.bf16.vlgmr.msrb.gmra.mxu2 %vm841_vm2, %v987_v4 }
 0x24c   : > { %1225 = vmatpush.bf16.msrb.mxu2 %v1216_v5 }
 0x24e   : > { %v983_v6 = vpop.f32.mrf.mxu1 }
 0x254   : > { %v888_v7 = vpop.f32.mrf.mxu2 }
 0x256   : > { %v1083_v8 = vpop.f32.mrf.mxu1 }
 0x257   : > { %v1087_v9 = vsel %vm2033_vm5, -1e+09, %v1083_v8 }
 0x258   : > { %v1088_v10 = vsel %vm841_vm2, %v1087_v9, -inf }
 0x259   : > { %1089 = vmax.xlane.f32.xlu1 %v1088_v10 }
 0x25c   : > { %v890_v11 = vpop.f32.mrf.mxu2 }
 0x25e   : > { %v1085_v13 = vpop.f32.mrf.mxu1 }
 0x266   : > { %v1197_v14 = vpop.f32.mrf.mxu1 }
 0x267   : > { %v1201_v12 = vsel %vm2033_vm5, -1e+09, %v1197_v14 }
 0x268   : > { %v1202_v15 = vsel %vm841_vm2, %v1201_v12, -inf }
 0x269   : > { %1203 = vmax.xlane.f32.xlu2 %v1202_v15 }
 0x26e   : > { %v1199_v16 = vpop.f32.mrf.mxu1 }
 0x271   : > { %869 = vadd.xlane.f32.xlu2 %v868_v17 }
 0x2cc   : > { %v1090_v19 = vpop.xlane.xlu1 %1089 }
 0x2cd   : > { %v1091_v21 = vsub.f32 %v1087_v9, %v1090_v19 }
 0x2ce   : > { %v1005_v24 = vpop.f32.mrf.mxu2 }
 0x2cf   : > { %v1092_v25 = vmul.f32 1.442695, %v1091_v21 }
 0x2d1   : > { %1663 = vpow2.f32 %v1092_v25 }
 0x2d6   : > { %v1007_v22 = vpop.f32.mrf.mxu2 }
 0x2d7   : > { %v1664_v26 = vpop.eup %1663 }
 0x2d8   : > { %v1097_v27 = vpack.c.bf16 %v1664_v26, %v1664_v26  ;;  %v1094_v28 = vsel %vm841_vm2, %v1664_v26, 0.0 }
 0x2d9   : > { %1095 = vadd.xlane.f32.xlu0 %v1094_v28 }
 0x2da   : > { %1539 = vmatmul.msk.bf16.vlgmr.msra.gmra.mxu2 %vm841_vm2, %v1097_v27 }
 0x2dc   : > { %v1204_v29 = vpop.xlane.xlu2 %1203 }
 0x2dd   : > { %v1205_v18 = vsub.f32 %v1201_v12, %v1204_v29 }
 0x2df   : > { %v1206_v30 = vmul.f32 1.442695, %v1205_v18 }
 0x2e1   : > { %1665 = vpow2.f32 %v1206_v30 }
 0x2e4   : > { %v870_v31 = vpop.xlane.xlu2 %869 }
 0x2e5   : > { %1667 = vrcp.f32 %v870_v31 }
 0x2e7   : > { %v1666_v32 = vpop.eup %1665 }
 0x2e8   : > { %v1211_v33 = vpack.c.bf16 %v1666_v32, %v1666_v32  ;;  %v1208_v34 = vsel %vm841_vm2, %v1666_v32, 0.0 }
 0x2e9   : > { %1209 = vadd.xlane.f32.xlu1 %v1208_v34 }
 0x2ea   : > { %1557 = vmatmul.msk.bf16.vlgmr.msrb.gmra.mxu2 %vm841_vm2, %v1211_v33 }
 0x2eb   : > { %v1668_v35 = vpop.eup %1667 }
 0x2ec   : > { %v893_v36 = vmul.f32 %v1668_v35, %v888_v7 }
 0x2ee   : > { %v894_v37 = vpack.c.bf16 %v893_v36, %v893_v36 }
 0x2f0   : > { %1523 = vmatmul.msk.bf16.vlgmr.msrb.gmra.mxu3 %vm841_vm2, %v894_v37 }
 0x2f1   : > { %1249 = vmatpush.bf16.msrb.mxu3 %v1240_v41 }
 0x34c   : > { %v1096_v42 = vpop.xlane.xlu0 %1095 }
 0x34d   : > { %1669 = vrcp.f32 %v1096_v42 }
 0x353   : > { %v1670_v43 = vpop.eup %1669 }
 0x35c   : > { %v1210_v47 = vpop.xlane.xlu1 %1209 }
 0x35d   : > { %v1113_v44 = vpop.f32.mrf.mxu2  ;;  %1671 = vrcp.f32 %v1210_v47 }
 0x35e   : > { %v1118_v45 = vmul.f32 %v1670_v43, %v1113_v44 }
 0x360   : > { %v1119_v46 = vpack.c.bf16 %v1118_v45, %v1118_v45 }
 0x362   : > { %1541 = vmatmul.msk.bf16.vlgmr.msra.gmra.mxu3 %vm841_vm2, %v1119_v46 }
 0x363   : > { %v1672_v49 = vpop.eup %1671 }
 0x365   : > { %v1115_v48 = vpop.f32.mrf.mxu2 }
 0x36d   : > { %v1227_v50 = vpop.f32.mrf.mxu2 }
 0x36e   : > { %v1232_v51 = vmul.f32 %v1672_v49, %v1227_v50 }
 0x370   : > { %v1233_v52 = vpack.c.bf16 %v1232_v51, %v1232_v51 }
 0x372   : > { %1559 = vmatmul.msk.bf16.vlgmr.msrb.gmra.mxu3 %vm841_vm2, %v1233_v52 }
 0x373   : > { %v1024_v53 = vpop.f32.mrf.mxu3 }
 0x374   : > { %v1025_v58 = vadd.f32 %v1024_v53, %v1005_v24 }
 0x375   : > { %v1229_v54 = vpop.f32.mrf.mxu2 }
 0x37b   : > { %v1026_v55 = vpop.f32.mrf.mxu3 }
 0x3e5   : > { %v1137_v56 = vpop.f32.mrf.mxu3 }
 0x3e6   : > { %v1141_v59 = vadd.f32 %v1137_v56, %v1025_v58 }
 0x3ed   : > { %v1139_v57 = vpop.f32.mrf.mxu3 }
 0x3f5   : > { %v1251_v61 = vpop.f32.mrf.mxu3 }
 0x3f6   : > { %v1255_v62 = vadd.f32 %v1251_v61, %v1141_v59 }
 0x3f8   : > { %v1260_v63 = vadd.f32 %v1656_v60, %v1255_v62 }
 0x3fa   : > { %1261 = vst.msk [vmem:[%s463_s17] sm:$0xff] %vm509_vm0, %v1260_v63 }
 0x3fb   : > { %1700 = shalt.err (!%p1697_p5)
}
 0x3fc   : > { %1588 = dma.vmem_to_hbm [thread:$0]  (%p1859_p4), %s1277_s19, 128, %s1279_s20, %s1263_s24  }
 0x3fd   : > { %v1253_v0 = vpop.f32.mrf.mxu3 }
 0x3fe PF: > { %s2162_s18 = sld [smem:[#allocation7_spill]]  ;;  %p1594_p6 = scmp.ge.s32.totalorder %s1751_s26, 2 }
 0x400   : > { %p1591_p7 = pnand %p1594_p6, %p1866_p8 }
 0x402   : > { %p1592_p9 = pneg %p1591_p7 }
 0x404   : > { %s1290_s16 = sand.u32 1, %s2162_s18  }
 0x405   : > { %s1291_s25 = scalar_lea.sflag [#allocation5], %s1290_s16 }
 0x406   : > { %1726 = dma.done.wait (%p1592_p9), %s1291_s25, 128  }
 0x407   : > { %1728 = vsyncadd (%p1592_p9), %s1291_s25, 4294967168  ;;  %s25_s26 = sadd.s32 1, %s1751_s26   ;;  %s2164_s17 = sld [smem:[#allocation8_spill]] }
 0x408   : > { %p22_p10 = scmp.ge.s32.totalorder %s25_s26, 4   ;;  %s2165_s23 = sld [smem:[#allocation12_spill]] }
 0x409   : > { %s2166_s24 = sld [smem:[#allocation9_spill]]  ;;  %s2168_s21 = smov %s1735_s22 }
 0x40a   : > { %s2167_s25 = sld [smem:[#allocation10_spill]]  ;;  %24 = sbr.rel (!%p22_p10) target bundleno = 4 (0x4), region = 149 }
 0x40d   : > { %s2169_s22 = smov %s2164_s17 }
 0x40f   :  { %1297 = vsyncpa [#allocation5], 1 }
 0x410   :  { %1299 = vsyncpa [#allocation5 + $0x1], 1 }

</bundles_post_ra>
